<compile_context>
chip_gen: v5e
topology: v5e:2x2
jax: 0.10.0
libtpu: 0.0.40
codegen_flags: <defaults>
</compile_context>

<pallas_src>
import math

import jax
import jax.numpy as jnp
from jax.experimental import pallas as pl
from jax.experimental.pallas import tpu as pltpu

LOG_STD_MAX = 2.0
LOG_STD_MIN = -15.0


def _round_up(x, m):
    return ((x + m - 1) // m) * m


def _cdiv(a, b):
    return -(-a // b)


def _make_kernel(act_dim, with_logprob):
    half_log_2pi = 0.5 * math.log(2.0 * math.pi)
    log2 = math.log(2.0)

    def kernel(obs_ref, w1_ref, b1_ref, w2_ref, b2_ref,
               wmu_ref, bmu_ref, wls_ref, bls_ref, eps_ref, out_ref):
        # net = mlp([obs_dim, h1, h2], ReLU, output_activation=ReLU)
        x = obs_ref[...].astype(jnp.bfloat16)                 # (TB, obs_dim)
        h = jnp.dot(x, w1_ref[...],
                    preferred_element_type=jnp.float32) + b1_ref[...]
        h = jnp.maximum(h, 0.0)
        h = jnp.dot(h.astype(jnp.bfloat16), w2_ref[...],
                    preferred_element_type=jnp.float32) + b2_ref[...]
        h = jnp.maximum(h, 0.0)
        hb = h.astype(jnp.bfloat16)

        # Separate mu / log_std heads (lane-offset-0 results; no head slicing).
        mu = jnp.dot(hb, wmu_ref[...],
                     preferred_element_type=jnp.float32) + bmu_ref[...]
        log_std = jnp.dot(hb, wls_ref[...],
                          preferred_element_type=jnp.float32) + bls_ref[...]
        log_std = jnp.clip(log_std, LOG_STD_MIN, LOG_STD_MAX)
        std = jnp.exp(log_std)

        # rsample: a = mu + std * eps, eps ~ N(0,1) supplied from host.
        eps = eps_ref[...]
        a = mu + std * eps

        if with_logprob:
            out_ref[:, :act_dim] = jnp.tanh(a)
            # Normal(mu, std).log_prob(a).sum(-1); (a - mu)/std == eps.
            logp = jnp.sum(-0.5 * eps * eps - log_std - half_log_2pi,
                           axis=-1, keepdims=True)
            # tanh-squash correction: - sum( 2*(log 2 - a - softplus(-2a)) )
            softplus_m2a = jnp.logaddexp(0.0, -2.0 * a)
            logp = logp - jnp.sum(2.0 * (log2 - a - softplus_m2a),
                                  axis=-1, keepdims=True)
            out_ref[:, act_dim:] = logp
        else:
            out_ref[...] = jnp.tanh(a)

    return kernel


def prepare_params(params):
    """Hoisted, do-once parameter prep: bf16 MXU weights, f32 biases."""
    return {
        "w1": params["w1"].astype(jnp.bfloat16),
        "b1": params["b1"].astype(jnp.float32),
        "w2": params["w2"].astype(jnp.bfloat16),
        "b2": params["b2"].astype(jnp.float32),
        "wmu": params["wmu"].astype(jnp.bfloat16),
        "bmu": params["bmu"].astype(jnp.float32),
        "wls": params["wls"].astype(jnp.bfloat16),
        "bls": params["bls"].astype(jnp.float32),
    }


def mlp_action_sampler(obs, prep, eps, with_logprob=False, *, tile_b=None):
    """obs: (B, obs_dim) f32, eps: (B, act_dim) f32 ~ N(0,1), prep from
    prepare_params(). Returns (tanh(a), logp_pi or None)."""
    B, obs_dim = obs.shape
    act_dim = prep["wmu"].shape[1]

    if tile_b is None:
        if B <= 16:
            tile_b = 8
        else:
            # >=2 grid steps (v7x megacore), <=512 rows/step.
            tile_b = min(512, _round_up(_cdiv(B, 2), 8))
    tile_b = max(8, _round_up(tile_b, 8))

    grid = (_cdiv(B, tile_b),)
    out_w = act_dim + 1 if with_logprob else act_dim

    def resident(arr):  # full-shape block, constant index -> stays in VMEM
        return pl.BlockSpec(arr.shape, lambda i: (0, 0))

    out = pl.pallas_call(
        _make_kernel(act_dim, with_logprob),
        grid=grid,
        in_specs=[
            pl.BlockSpec((tile_b, obs_dim), lambda i: (i, 0)),
            resident(prep["w1"]), resident(prep["b1"]),
            resident(prep["w2"]), resident(prep["b2"]),
            resident(prep["wmu"]), resident(prep["bmu"]),
            resident(prep["wls"]), resident(prep["bls"]),
            pl.BlockSpec((tile_b, act_dim), lambda i: (i, 0)),
        ],
        out_specs=pl.BlockSpec((tile_b, out_w), lambda i: (i, 0)),
        out_shape=jax.ShapeDtypeStruct((B, out_w), jnp.float32),
        compiler_params=pltpu.CompilerParams(
            dimension_semantics=("parallel",)),
    )(obs, prep["w1"], prep["b1"], prep["w2"], prep["b2"],
      prep["wmu"], prep["bmu"], prep["wls"], prep["bls"], eps)

    if with_logprob:
        return out[:, :act_dim], out[:, act_dim]
    return out, None


def init_params(key, obs_dim, hidden_sizes, act_dim):
    """Deterministic synthetic init (PyTorch-Linear-like uniform bounds)."""
    sizes = [obs_dim] + list(hidden_sizes)
    keys = jax.random.split(key, 8)
    params = {}

    def linear(kw, kb, fan_in, fan_out):
        bound = 1.0 / math.sqrt(fan_in)
        w = jax.random.uniform(kw, (fan_in, fan_out), jnp.float32, -bound, bound)
        b = jax.random.uniform(kb, (1, fan_out), jnp.float32, -bound, bound)
        return w, b

    params["w1"], params["b1"] = linear(keys[0], keys[1], sizes[0], sizes[1])
    params["w2"], params["b2"] = linear(keys[2], keys[3], sizes[1], sizes[2])
    params["wmu"], params["bmu"] = linear(keys[4], keys[5], sizes[2], act_dim)
    params["wls"], params["bls"] = linear(keys[6], keys[7], sizes[2], act_dim)
    return params


def reference(obs, params, eps, with_logprob):
    """Pure-JAX f32 reference of the PyTorch forward (eps supplied)."""
    h = jnp.maximum(obs @ params["w1"] + params["b1"], 0.0)
    h = jnp.maximum(h @ params["w2"] + params["b2"], 0.0)
    mu = h @ params["wmu"] + params["bmu"]
    log_std = jnp.clip(h @ params["wls"] + params["bls"],
                       LOG_STD_MIN, LOG_STD_MAX)
    std = jnp.exp(log_std)
    a = mu + std * eps
    if with_logprob:
        logp = jnp.sum(-0.5 * eps * eps - log_std
                       - 0.5 * math.log(2.0 * math.pi), axis=-1)
        logp = logp - jnp.sum(
            2.0 * (math.log(2.0) - a - jax.nn.softplus(-2.0 * a)), axis=-1)
    else:
        logp = None
    return jnp.tanh(a), logp


if __name__ == "__main__":
    # Small shapes; B=30 with default tiling -> 2 grid steps + a partial block.
    B, obs_dim, act_dim = 30, 16, 4
    hidden_sizes = (32, 32)

    key = jax.random.PRNGKey(0)
    k_param, k_obs, k_eps = jax.random.split(key, 3)

    params = init_params(k_param, obs_dim, hidden_sizes, act_dim)
    prep = prepare_params(params)                    # hoisted, done once
    obs = jax.random.normal(k_obs, (B, obs_dim), jnp.float32)
    eps = jax.random.normal(k_eps, (B, act_dim), jnp.float32)

    # with_logprob=True variant
    a, logp_pi = mlp_action_sampler(obs, prep, eps, with_logprob=True)
    jax.block_until_ready(a)
    jax.block_until_ready(logp_pi)
    assert a.shape == (B, act_dim)
    assert logp_pi.shape == (B,)
    assert bool(jnp.all(jnp.isfinite(a)))
    assert bool(jnp.all(jnp.isfinite(logp_pi)))

    # Check against f32 reference (loose tolerance: bf16 MXU operands).
    a_ref, logp_ref = reference(obs, params, eps, True)
    assert bool(jnp.allclose(a, a_ref, atol=1e-1, rtol=1e-1))
    assert bool(jnp.allclose(logp_pi, logp_ref, atol=2.5e-1, rtol=1e-1))

    # with_logprob=False variant (skips all logp work in-kernel)
    a2, logp_none = mlp_action_sampler(obs, prep, eps, with_logprob=False)
    jax.block_until_ready(a2)
    assert logp_none is None
    assert a2.shape == (B, act_dim)
    assert bool(jnp.all(jnp.isfinite(a2)))
    assert bool(jnp.allclose(a, a2, atol=1e-5, rtol=1e-5))

    print("KERNEL_OK")
</pallas_src>

<mosaic_0001>
module attributes {stable_mosaic.version = 11 : i64} {
  func.func @kernel(%arg0: i32, %arg1: memref<16x16xf32, #tpu.memory_space<vmem>>, %arg2: memref<16x32xbf16, #tpu.memory_space<vmem>>, %arg3: memref<1x32xf32, #tpu.memory_space<vmem>>, %arg4: memref<32x32xbf16, #tpu.memory_space<vmem>>, %arg5: memref<1x32xf32, #tpu.memory_space<vmem>>, %arg6: memref<32x4xbf16, #tpu.memory_space<vmem>>, %arg7: memref<1x4xf32, #tpu.memory_space<vmem>>, %arg8: memref<32x4xbf16, #tpu.memory_space<vmem>>, %arg9: memref<1x4xf32, #tpu.memory_space<vmem>>, %arg10: memref<16x4xf32, #tpu.memory_space<vmem>>, %arg11: memref<16x5xf32, #tpu.memory_space<vmem>>) attributes {dimension_semantics = [#tpu.dimension_semantics<parallel>], iteration_bounds = array<i64: 2>, scalar_prefetch = 0 : i64, scratch_operands = 0 : i64, tpu.core_type = #tpu.core_type<tc>, window_params = [{transform_indices = @transform_0, window_bounds = array<i64: 16, 16>}, {pipeline_mode = #tpu.pipeline_mode<synchronous>, transform_indices = @transform_1, window_bounds = array<i64: 16, 32>}, {pipeline_mode = #tpu.pipeline_mode<synchronous>, transform_indices = @transform_2, window_bounds = array<i64: 1, 32>}, {pipeline_mode = #tpu.pipeline_mode<synchronous>, transform_indices = @transform_3, window_bounds = array<i64: 32, 32>}, {pipeline_mode = #tpu.pipeline_mode<synchronous>, transform_indices = @transform_4, window_bounds = array<i64: 1, 32>}, {pipeline_mode = #tpu.pipeline_mode<synchronous>, transform_indices = @transform_5, window_bounds = array<i64: 32, 4>}, {pipeline_mode = #tpu.pipeline_mode<synchronous>, transform_indices = @transform_6, window_bounds = array<i64: 1, 4>}, {pipeline_mode = #tpu.pipeline_mode<synchronous>, transform_indices = @transform_7, window_bounds = array<i64: 32, 4>}, {pipeline_mode = #tpu.pipeline_mode<synchronous>, transform_indices = @transform_8, window_bounds = array<i64: 1, 4>}, {transform_indices = @transform_9, window_bounds = array<i64: 16, 4>}, {transform_indices = @transform_10, window_bounds = array<i64: 16, 5>}]} {
    %c0 = arith.constant 0 : index
    %c0_0 = arith.constant 0 : index
    %0 = vector.load %arg1[%c0, %c0_0] : memref<16x16xf32, #tpu.memory_space<vmem>>, vector<16x16xf32>
    %1 = arith.truncf %0 : vector<16x16xf32> to vector<16x16xbf16>
    %c0_1 = arith.constant 0 : index
    %c0_2 = arith.constant 0 : index
    %2 = vector.load %arg2[%c0_1, %c0_2] : memref<16x32xbf16, #tpu.memory_space<vmem>>, vector<16x32xbf16>
    %cst = arith.constant dense<0.000000e+00> : vector<16x32xf32>
    %3 = tpu.matmul %1, %2, %cst {dimension_numbers = #tpu.dot_dimension_numbers<[1], [0], [0], [1], [0, 0, 1, 1], [], []>} : vector<16x16xbf16>, vector<16x32xbf16>, vector<16x32xf32> -> vector<16x32xf32>
    %c0_3 = arith.constant 0 : index
    %c0_4 = arith.constant 0 : index
    %4 = vector.load %arg3[%c0_3, %c0_4] : memref<1x32xf32, #tpu.memory_space<vmem>>, vector<1x32xf32>
    %5 = vector.broadcast %4 : vector<1x32xf32> to vector<16x32xf32>
    %6 = arith.addf %3, %5 : vector<16x32xf32>
    %cst_5 = arith.constant 0.000000e+00 : f32
    %7 = vector.broadcast %cst_5 : f32 to vector<16x32xf32>
    %8 = arith.maximumf %6, %7 : vector<16x32xf32>
    %9 = arith.truncf %8 : vector<16x32xf32> to vector<16x32xbf16>
    %c0_6 = arith.constant 0 : index
    %c0_7 = arith.constant 0 : index
    %10 = vector.load %arg4[%c0_6, %c0_7] : memref<32x32xbf16, #tpu.memory_space<vmem>>, vector<32x32xbf16>
    %cst_8 = arith.constant dense<0.000000e+00> : vector<16x32xf32>
    %11 = tpu.matmul %9, %10, %cst_8 {dimension_numbers = #tpu.dot_dimension_numbers<[1], [0], [0], [1], [0, 0, 1, 1], [], []>} : vector<16x32xbf16>, vector<32x32xbf16>, vector<16x32xf32> -> vector<16x32xf32>
    %c0_9 = arith.constant 0 : index
    %c0_10 = arith.constant 0 : index
    %12 = vector.load %arg5[%c0_9, %c0_10] : memref<1x32xf32, #tpu.memory_space<vmem>>, vector<1x32xf32>
    %13 = vector.broadcast %12 : vector<1x32xf32> to vector<16x32xf32>
    %14 = arith.addf %11, %13 : vector<16x32xf32>
    %cst_11 = arith.constant 0.000000e+00 : f32
    %15 = vector.broadcast %cst_11 : f32 to vector<16x32xf32>
    %16 = arith.maximumf %14, %15 : vector<16x32xf32>
    %17 = arith.truncf %16 : vector<16x32xf32> to vector<16x32xbf16>
    %c0_12 = arith.constant 0 : index
    %c0_13 = arith.constant 0 : index
    %18 = vector.load %arg6[%c0_12, %c0_13] : memref<32x4xbf16, #tpu.memory_space<vmem>>, vector<32x4xbf16>
    %cst_14 = arith.constant dense<0.000000e+00> : vector<16x4xf32>
    %19 = tpu.matmul %17, %18, %cst_14 {dimension_numbers = #tpu.dot_dimension_numbers<[1], [0], [0], [1], [0, 0, 1, 1], [], []>} : vector<16x32xbf16>, vector<32x4xbf16>, vector<16x4xf32> -> vector<16x4xf32>
    %c0_15 = arith.constant 0 : index
    %c0_16 = arith.constant 0 : index
    %20 = vector.load %arg7[%c0_15, %c0_16] : memref<1x4xf32, #tpu.memory_space<vmem>>, vector<1x4xf32>
    %21 = vector.broadcast %20 : vector<1x4xf32> to vector<16x4xf32>
    %22 = arith.addf %19, %21 : vector<16x4xf32>
    %c0_17 = arith.constant 0 : index
    %c0_18 = arith.constant 0 : index
    %23 = vector.load %arg8[%c0_17, %c0_18] : memref<32x4xbf16, #tpu.memory_space<vmem>>, vector<32x4xbf16>
    %cst_19 = arith.constant dense<0.000000e+00> : vector<16x4xf32>
    %24 = tpu.matmul %17, %23, %cst_19 {dimension_numbers = #tpu.dot_dimension_numbers<[1], [0], [0], [1], [0, 0, 1, 1], [], []>} : vector<16x32xbf16>, vector<32x4xbf16>, vector<16x4xf32> -> vector<16x4xf32>
    %c0_20 = arith.constant 0 : index
    %c0_21 = arith.constant 0 : index
    %25 = vector.load %arg9[%c0_20, %c0_21] : memref<1x4xf32, #tpu.memory_space<vmem>>, vector<1x4xf32>
    %26 = vector.broadcast %25 : vector<1x4xf32> to vector<16x4xf32>
    %27 = arith.addf %24, %26 : vector<16x4xf32>
    %cst_22 = arith.constant -1.500000e+01 : f32
    %cst_23 = arith.constant 2.000000e+00 : f32
    %28 = vector.broadcast %cst_22 : f32 to vector<16x4xf32>
    %29 = arith.maximumf %28, %27 : vector<16x4xf32>
    %30 = vector.broadcast %cst_23 : f32 to vector<16x4xf32>
    %31 = arith.minimumf %30, %29 : vector<16x4xf32>
    %32 = math.exp %31 : vector<16x4xf32>
    %c0_24 = arith.constant 0 : index
    %c0_25 = arith.constant 0 : index
    %33 = vector.load %arg10[%c0_24, %c0_25] : memref<16x4xf32, #tpu.memory_space<vmem>>, vector<16x4xf32>
    %34 = arith.mulf %32, %33 : vector<16x4xf32>
    %35 = arith.addf %22, %34 : vector<16x4xf32>
    %36 = math.tanh %35 : vector<16x4xf32>
    %c0_26 = arith.constant 0 : index
    %c0_27 = arith.constant 0 : index
    %37 = vector.load %arg11[%c0_26, %c0_27] : memref<16x5xf32, #tpu.memory_space<vmem>>, vector<16x4xf32>
    tpu.vector_store %arg11[%c0_26, %c0_27], %36 {strides = array<i32>} : memref<16x5xf32, #tpu.memory_space<vmem>>, vector<16x4xf32>,
    %cst_28 = arith.constant -5.000000e-01 : f32
    %38 = vector.broadcast %cst_28 : f32 to vector<16x4xf32>
    %39 = arith.mulf %38, %33 : vector<16x4xf32>
    %40 = arith.mulf %39, %33 : vector<16x4xf32>
    %41 = arith.subf %40, %31 : vector<16x4xf32>
    %cst_29 = arith.constant 0.918938517 : f32
    %42 = vector.broadcast %cst_29 : f32 to vector<16x4xf32>
    %43 = arith.subf %41, %42 : vector<16x4xf32>
    %cst_30 = arith.constant dense<0.000000e+00> : vector<16xf32>
    %44 = vector.multi_reduction <add>, %43, %cst_30 [1] : vector<16x4xf32> to vector<16xf32>
    %45 = vector.shape_cast %44 : vector<16xf32> to vector<16x1xf32>
    %cst_31 = arith.constant -2.000000e+00 : f32
    %46 = vector.broadcast %cst_31 : f32 to vector<16x4xf32>
    %47 = arith.mulf %46, %35 : vector<16x4xf32>
    %cst_32 = arith.constant 0.000000e+00 : f32
    %48 = vector.broadcast %cst_32 : f32 to vector<16x4xf32>
    %49 = arith.maximumf %48, %47 : vector<16x4xf32>
    %50 = vector.broadcast %cst_32 : f32 to vector<16x4xf32>
    %51 = arith.subf %50, %47 : vector<16x4xf32>
    %52 = arith.cmpf one, %51, %51 : vector<16x4xf32>
    %53 = vector.broadcast %cst_32 : f32 to vector<16x4xf32>
    %54 = arith.addf %53, %47 : vector<16x4xf32>
    %55 = math.absf %51 : vector<16x4xf32>
    %cst_33 = arith.constant 0.000000e+00 : f32
    %56 = vector.broadcast %cst_33 : f32 to vector<16x4xf32>
    %57 = arith.subf %56, %55 : vector<16x4xf32>
    %58 = math.exp %57 : vector<16x4xf32>
    %59 = math.log1p %58 : vector<16x4xf32>
    %60 = arith.addf %49, %59 : vector<16x4xf32>
    %61 = arith.select %52, %54, %60 : vector<16x4xi1>, vector<16x4xf32>
    %cst_34 = arith.constant 0.693147182 : f32
    %62 = vector.broadcast %cst_34 : f32 to vector<16x4xf32>
    %63 = arith.subf %62, %35 : vector<16x4xf32>
    %64 = arith.subf %63, %61 : vector<16x4xf32>
    %cst_35 = arith.constant 2.000000e+00 : f32
    %65 = vector.broadcast %cst_35 : f32 to vector<16x4xf32>
    %66 = arith.mulf %65, %64 : vector<16x4xf32>
    %cst_36 = arith.constant dense<0.000000e+00> : vector<16xf32>
    %67 = vector.multi_reduction <add>, %66, %cst_36 [1] : vector<16x4xf32> to vector<16xf32>
    %68 = vector.shape_cast %67 : vector<16xf32> to vector<16x1xf32>
    %69 = arith.subf %45, %68 : vector<16x1xf32>
    %c0_37 = arith.constant 0 : index
    %c4 = arith.constant 4 : index
    %70 = vector.load %arg11[%c0_37, %c4] : memref<16x5xf32, #tpu.memory_space<vmem>>, vector<16x1xf32>
    tpu.vector_store %arg11[%c0_37, %c4], %69 {strides = array<i32>} : memref<16x5xf32, #tpu.memory_space<vmem>>, vector<16x1xf32>,
    return
  }
  func.func @transform_0(%arg0: i32) -> (i32, i32) {
    %c0_i32 = arith.constant 0 : i32
    %c0_i32_0 = arith.constant 0 : i32
    return %arg0, %c0_i32 : i32, i32
  }
  func.func @transform_1(%arg0: i32) -> (i32, i32) {
    %c0_i32 = arith.constant 0 : i32
    %c0_i32_0 = arith.constant 0 : i32
    %c0_i32_1 = arith.constant 0 : i32
    return %c0_i32, %c0_i32_0 : i32, i32
  }
  func.func @transform_2(%arg0: i32) -> (i32, i32) {
    %c0_i32 = arith.constant 0 : i32
    %c0_i32_0 = arith.constant 0 : i32
    %c0_i32_1 = arith.constant 0 : i32
    return %c0_i32, %c0_i32_0 : i32, i32
  }
  func.func @transform_3(%arg0: i32) -> (i32, i32) {
    %c0_i32 = arith.constant 0 : i32
    %c0_i32_0 = arith.constant 0 : i32
    %c0_i32_1 = arith.constant 0 : i32
    return %c0_i32, %c0_i32_0 : i32, i32
  }
  func.func @transform_4(%arg0: i32) -> (i32, i32) {
    %c0_i32 = arith.constant 0 : i32
    %c0_i32_0 = arith.constant 0 : i32
    %c0_i32_1 = arith.constant 0 : i32
    return %c0_i32, %c0_i32_0 : i32, i32
  }
  func.func @transform_5(%arg0: i32) -> (i32, i32) {
    %c0_i32 = arith.constant 0 : i32
    %c0_i32_0 = arith.constant 0 : i32
    %c0_i32_1 = arith.constant 0 : i32
    return %c0_i32, %c0_i32_0 : i32, i32
  }
  func.func @transform_6(%arg0: i32) -> (i32, i32) {
    %c0_i32 = arith.constant 0 : i32
    %c0_i32_0 = arith.constant 0 : i32
    %c0_i32_1 = arith.constant 0 : i32
    return %c0_i32, %c0_i32_0 : i32, i32
  }
  func.func @transform_7(%arg0: i32) -> (i32, i32) {
    %c0_i32 = arith.constant 0 : i32
    %c0_i32_0 = arith.constant 0 : i32
    %c0_i32_1 = arith.constant 0 : i32
    return %c0_i32, %c0_i32_0 : i32, i32
  }
  func.func @transform_8(%arg0: i32) -> (i32, i32) {
    %c0_i32 = arith.constant 0 : i32
    %c0_i32_0 = arith.constant 0 : i32
    %c0_i32_1 = arith.constant 0 : i32
    return %c0_i32, %c0_i32_0 : i32, i32
  }
  func.func @transform_9(%arg0: i32) -> (i32, i32) {
    %c0_i32 = arith.constant 0 : i32
    %c0_i32_0 = arith.constant 0 : i32
    return %arg0, %c0_i32 : i32, i32
  }
  func.func @transform_10(%arg0: i32) -> (i32, i32) {
    %c0_i32 = arith.constant 0 : i32
    %c0_i32_0 = arith.constant 0 : i32
    return %arg0, %c0_i32 : i32, i32
  }
}

</mosaic_0001>

<bundles_post_ra>
// kernel: tpu_custom_call.1
= control target key start
LH: loop header
LB: loop body
LE: loop exit
PB: predicated region body
PF: predicated region fallthrough
CT: control target
= control target key end

     0   :  { %s837_s13 = smov 0   ;;  %s910_s0 = inlined_call_operand.vmem [shape: f32[30,16], index: 0, kind: input, shape index: {}]   ;;  %s911_s1 = inlined_call_operand.vmem [shape: bf16[16,32], index: 1, kind: input, shape index: {}]   ;;  %s912_s2 = inlined_call_operand.vmem [shape: f32[1,32], index: 2, kind: input, shape index: {}]   ;;  %s913_s3 = inlined_call_operand.vmem [shape: bf16[32,32], index: 3, kind: input, shape index: {}]   ;;  %s914_s4 = inlined_call_operand.vmem [shape: f32[1,32], index: 4, kind: input, shape index: {}]   ;;  %s915_s5 = inlined_call_operand.vmem [shape: bf16[32,4], index: 5, kind: input, shape index: {}]   ;;  %s916_s6 = inlined_call_operand.vmem [shape: f32[1,4], index: 6, kind: input, shape index: {}]   ;;  %s917_s7 = inlined_call_operand.vmem [shape: bf16[32,4], index: 7, kind: input, shape index: {}]   ;;  %s918_s8 = inlined_call_operand.vmem [shape: f32[1,4], index: 8, kind: input, shape index: {}]   ;;  %s919_s9 = inlined_call_operand.vmem [shape: f32[30,4], index: 9, kind: input, shape index: {}]   ;;  %s920_s10 = inlined_call_operand.vmem [shape: f32[30,5], index: 10, kind: output, shape index: {}]  }
   0x1 LB: > { %s692_s14 = sadd.s32 4294967295, %s780_s13   ;;  %p696_p0 = scmp.ge.s32.totalorder %s780_s13, 1  ;;  %s780_s13 = sphi %s837_s13, %s20_s13  }
   0x2   : > { %p324_p1 = scmp.lt.s32.totalorder %s780_s13, 3 }
   0x4   : > { %p325_p2 = pnand %p696_p0, %p324_p1 }
   0x5   : > { %s697_s17 = sshll.u32 (!%p325_p2), %s692_s14, 1 }
   0x6   : > { %328 = sbr.rel (%p325_p2) target bundleno = 612 (0x264), region = 60  ;;  %p368_p3 = scmp.lt.s32.totalorder (!%p325_p2), %s697_s17, 3 }
   0xb   : > { %v739_v0 = vld [vmem:[%s911_s1] sm:$0xff]  ;;  %s922_s17 = smov (!%p368_p3, %s697_s17), 3  ;;  %vm401_vm0 = vcmask 130048   ;;  %v741_v4 = vld [vmem:[%s913_s3 + $0x8] sm:$0xff]  ;;  %vm442_vm1 = vcmask 261120   ;;  %vm550_vm2 = vcmask 31744  }
   0xc   : > { %412 = vmatpush.bf16.msra.mxu0 %v739_v0  ;;  %s848_s18 = sshll.u32 %s922_s17, 3  ;;  %452 = vmatpush.bf16.msra.mxu1 %v741_v4  ;;  %v740_v5 = vld [vmem:[%s913_s3] sm:$0xff]  ;;  %v743_v14 = vld [vmem:[%s915_s5 + $0x8] sm:$0xff]  ;;  %vm621_vm7 = vcmask 39968  }
   0xd   : > { %s371_s21 = scalar_lea.vmem %s910_s0, %s848_s18  ;;  %v754_v7 = vld [vmem:[%s912_s2] ss:$0 sm:$0xff]  ;;  %v745_v15 = vld [vmem:[%s917_s7 + $0x8] sm:$0xff]  ;;  %492 = vmatpush.bf16.msra.mxu2 %v743_v14  ;;  %s377_s22 = scalar_lea.vmem %s919_s9, %s848_s18 }
   0xe   : > { %v386_v1 = vld [vmem:[%s371_s21] sm:$0xff]  ;;  %v387_v2 = vld [vmem:[%s371_s21 + $0x8] sm:$0xff]  ;;  %526 = vmatpush.bf16.msra.mxu3 %v745_v15  ;;  %s897_s29 = scalar_lea.vmem %s920_s10, %s848_s18 }
   0xf   : > { %v388_v3 = vpack.c.bf16 %v387_v2, %v386_v1  ;;  %v742_v16 = vld [vmem:[%s915_s5] sm:$0xff]  ;;  %v543_v33 = vld [vmem:[%s377_s22 + $0x8] sm:$0xff] }
  0x10   : > { %453 = vmatpush.bf16.msra.mxu1 %v740_v5  ;;  %v744_v17 = vld [vmem:[%s917_s7] sm:$0xff]  ;;  %v554_v37 = vmul.f32 -0.5, %v543_v33 }
  0x11   : > { %707 = vmatmul.msk.bf16.vlgmr.msra.gmra.mxu0 %vm401_vm0, %v388_v3  ;;  %493 = vmatpush.bf16.msra.mxu2 %v742_v16  ;;  %v755_v19 = vld [vmem:[%s914_s4] ss:$0 sm:$0xff] }
  0x12   : > { %527 = vmatpush.bf16.msra.mxu3 %v744_v17  ;;  %v542_v26 = vld [vmem:[%s377_s22] sm:$0xff]  ;;  %v556_v44 = vmul.f32 %v554_v37, %v543_v33 }
  0x13   : > { %v757_v27 = vld [vmem:[%s918_s8] ss:$0 sm:$0xff]  ;;  %v553_v28 = vmul.f32 -0.5, %v542_v26 }
  0x14   : > { %v756_v45 = vld [vmem:[%s916_s6] ss:$0 sm:$0xff] }
  0x15   : > { %v555_v32 = vmul.f32 %v553_v28, %v542_v26 }
  0x8e   : > { %v414_v6 = vpop.f32.mrf.mxu0 }
  0x8f   : > { %v415_v8 = vadd.f32 %v754_v7, %v414_v6 }
  0x91   : > { %v419_v11 = vmax.f32 %v415_v8, 0.0 }
  0x96   : > { %v416_v9 = vpop.f32.mrf.mxu0 }
  0x97   : > { %v417_v10 = vadd.f32 %v754_v7, %v416_v9 }
  0x99   : > { %v420_v12 = vmax.f32 %v417_v10, 0.0 }
  0x9b   : > { %v421_v13 = vpack.c.bf16 %v420_v12, %v419_v11 }
  0x9d   : > { %716 = vmatmul.msk.bf16.vlgmr.msra.gmra.mxu1 %vm442_vm1, %v421_v13 }
 0x11a   : > { %v455_v18 = vpop.f32.mrf.mxu1 }
 0x11b   : > { %v456_v20 = vadd.f32 %v755_v19, %v455_v18 }
 0x11d   : > { %v460_v23 = vmax.f32 %v456_v20, 0.0 }
 0x122   : > { %v457_v21 = vpop.f32.mrf.mxu1 }
 0x123   : > { %v458_v22 = vadd.f32 %v755_v19, %v457_v21 }
 0x125   : > { %v461_v24 = vmax.f32 %v458_v22, 0.0 }
 0x127   : > { %v462_v25 = vpack.c.bf16 %v461_v24, %v460_v23 }
 0x129   : > { %725 = vmatmul.msk.bf16.vlgmr.msra.gmra.mxu2 %vm442_vm1, %v462_v25  ;;  %734 = vmatmul.msk.bf16.vlgmr.msra.gmra.mxu3 %vm442_vm1, %v462_v25 }
 0x1ac   : > { %v529_v29 = vpop.f32.mrf.mxu3  ;;  %v495_v41 = vpop.f32.mrf.mxu2 }
 0x1ad   : > { %v530_v30 = vadd.f32 %v757_v27, %v529_v29  ;;  %v496_v50 = vadd.f32 %v756_v45, %v495_v41 }
 0x1af   : > { %v534_v31 = vmax.f32 %v530_v30, -15.0 }
 0x1b1   : > { %v536_v34 = vmin.f32 %v534_v31, 2.0 }
 0x1b3   : > { %v538_v35 = vmul.f32 1.442695, %v536_v34  ;;  %v557_v36 = vsub.f32 %v555_v32, %v536_v34 }
 0x1b4   : > { %v531_v38 = vpop.f32.mrf.mxu3  ;;  %v497_v56 = vpop.f32.mrf.mxu2 }
 0x1b5   : > { %758 = vpow2.f32 %v538_v35  ;;  %v532_v39 = vadd.f32 %v757_v27, %v531_v38  ;;  %v735_v40 = vadd.f32 -0.9189385, %v557_v36  ;;  %v498_v59 = vadd.f32 %v756_v45, %v497_v56 }
 0x1b7   : > { %v535_v42 = vmax.f32 %v532_v39, -15.0  ;;  %v561_v43 = vsel %vm550_vm2, %v735_v40, 0.0 }
 0x1b8   : > { %562 = vadd.xlane.f32.xlu0 %v561_v43 }
 0x1b9   : > { %v537_v46 = vmin.f32 %v535_v42, 2.0 }
 0x1bb   : > { %v759_v47 = vpop.eup %758  ;;  %v540_v48 = vmul.f32 1.442695, %v537_v46  ;;  %v558_v49 = vsub.f32 %v556_v44, %v537_v46 }
 0x1bc   : > { %v544_v51 = vmul.f32 %v759_v47, %v542_v26 }
 0x1bd   : > { %760 = vpow2.f32 %v540_v48  ;;  %v736_v52 = vadd.f32 -0.9189385, %v558_v49 }
 0x1be   : > { %v546_v53 = vadd.f32 %v544_v51, %v496_v50 }
 0x1bf   : > { %v564_v54 = vsel %vm550_vm2, %v736_v52, 0.0 }
 0x1c0   : > { %565 = vadd.xlane.f32.xlu1 %v564_v54  ;;  %v567_v55 = vmul.f32 -2.0, %v546_v53  ;;  %762 = vtanh.f32 %v546_v53  ;;  %v607_v22 = vsub.f32 0.6931472, %v546_v53 }
 0x1c2   : > { %v571_v57 = vsub.f32 0.0, %v567_v55  ;;  %v569_v19 = vmax.f32 %v567_v55, 0.0 }
 0x1c3   : > { %v761_v58 = vpop.eup %760 }
 0x1c4   : > { %v545_v60 = vmul.f32 %v761_v58, %v543_v33  ;;  %v577_v61 = vand.u32 2147483647, %v571_v57  ;;  %vm573_vm4 = vcmp.ne.f32.partialorder %v571_v57, %v571_v57 }
 0x1c6   : > { %v763_v62 = vpop.eup %762  ;;  %v579_v63 = vsub.f32 0.0, %v577_v61  ;;  %v547_v0 = vadd.f32 %v545_v60, %v498_v59 }
 0x1c7   : > { %551 = vst.msk [vmem:[%s897_s29] sm:$0xff] %vm550_vm2, %v763_v62 }
 0x1c8   : > { %v581_v1 = vmul.f32 1.442695, %v579_v63  ;;  %v568_v2 = vmul.f32 -2.0, %v547_v0  ;;  %764 = vtanh.f32 %v547_v0  ;;  %v608_v35 = vsub.f32 0.6931472, %v547_v0 }
 0x1ca   : > { %766 = vpow2.f32 %v581_v1  ;;  %v572_v3 = vsub.f32 0.0, %v568_v2  ;;  %v570_v31 = vmax.f32 %v568_v2, 0.0 }
 0x1cc   : > { %v578_v4 = vand.u32 2147483647, %v572_v3  ;;  %vm574_vm6 = vcmp.ne.f32.partialorder %v572_v3, %v572_v3 }
 0x1ce   : > { %v765_v5 = vpop.eup %764  ;;  %v580_v6 = vsub.f32 0.0, %v578_v4 }
 0x1cf   : > { %552 = vst.msk [vmem:[%s897_s29 + $0x8] sm:$0xff] %vm550_vm2, %v765_v5 }
 0x1d0   : > { %v767_v7 = vpop.eup %766  ;;  %v583_v8 = vmul.f32 1.442695, %v580_v6 }
 0x1d1   : > { %v585_v9 = vadd.f32 1.0, %v767_v7  ;;  %v588_v10 = vmul.f32 -0.5, %v767_v7  ;;  %v591_v12 = vand.u32 2147483647, %v767_v7 }
 0x1d2   : > { %768 = vpow2.f32 %v583_v8 }
 0x1d3   : > { %770 = vlog2.f32 %v585_v9  ;;  %v589_v11 = vadd.f32 1.0, %v588_v10  ;;  %vm592_vm3 = vcmp.lt.f32.partialorder %v591_v12, 0.0004427343 }
 0x1d5   : > { %v590_v17 = vmul.f32 %v767_v7, %v589_v11 }
 0x1d8   : > { %v769_v13 = vpop.eup %768 }
 0x1d9   : > { %v771_v14 = vpop.eup %770  ;;  %v594_v15 = vadd.f32 1.0, %v769_v13  ;;  %v597_v18 = vmul.f32 -0.5, %v769_v13  ;;  %v600_v25 = vand.u32 2147483647, %v769_v13 }
 0x1da   : > { %v587_v16 = vmul.f32 0.6931472, %v771_v14 }
 0x1db   : > { %772 = vlog2.f32 %v594_v15  ;;  %v598_v23 = vadd.f32 1.0, %v597_v18  ;;  %vm601_vm5 = vcmp.lt.f32.partialorder %v600_v25, 0.0004427343 }
 0x1dc   : > { %v593_v20 = vsel %vm592_vm3, %v590_v17, %v587_v16 }
 0x1dd   : > { %v603_v21 = vadd.f32 %v593_v20, %v569_v19  ;;  %v599_v30 = vmul.f32 %v769_v13, %v598_v23 }
 0x1df   : > { %v605_v24 = vsel %vm573_vm4, %v567_v55, %v603_v21 }
 0x1e0   : > { %v609_v26 = vsub.f32 %v607_v22, %v605_v24 }
 0x1e1   : > { %v773_v27 = vpop.eup %772 }
 0x1e2   : > { %v611_v28 = vmul.f32 2.0, %v609_v26  ;;  %v596_v29 = vmul.f32 0.6931472, %v773_v27 }
 0x1e4   : > { %v613_v32 = vsel %vm550_vm2, %v611_v28, 0.0  ;;  %v602_v33 = vsel %vm601_vm5, %v599_v30, %v596_v29 }
 0x1e5   : > { %614 = vadd.xlane.f32.xlu0 %v613_v32  ;;  %v604_v34 = vadd.f32 %v602_v33, %v570_v31 }
 0x1e7   : > { %v606_v36 = vsel %vm574_vm6, %v568_v2, %v604_v34 }
 0x1e8   : > { %v610_v37 = vsub.f32 %v608_v35, %v606_v36 }
 0x1ea   : > { %v612_v38 = vmul.f32 2.0, %v610_v37 }
 0x1ec   : > { %v616_v39 = vsel %vm550_vm2, %v612_v38, 0.0 }
 0x1ed   : > { %617 = vadd.xlane.f32.xlu1 %v616_v39 }
 0x22b   : > { %v563_v40 = vpop.xlane.xlu0 %562 }
 0x233   : > { %v566_v41 = vpop.xlane.xlu1 %565 }
 0x258   : > { %v615_v42 = vpop.xlane.xlu0 %614 }
 0x259   : > { %v619_v43 = vsub.f32 %v563_v40, %v615_v42 }
 0x25b   : > { %622 = vst.msk [vmem:[%s897_s29] sm:$0xff] %vm621_vm7, %v619_v43 }
 0x260   : > { %v618_v44 = vpop.xlane.xlu1 %617 }
 0x261   : > { %v620_v45 = vsub.f32 %v566_v41, %v618_v44 }
 0x263   : > { %623 = vst.msk [vmem:[%s897_s29 + $0x8] sm:$0xff] %vm621_vm7, %v620_v45 }
 0x264 PF: > { %s20_s13 = sadd.s32 1, %s780_s13  }
 0x265   : > { %p17_p4 = scmp.ge.s32.totalorder %s20_s13, 4  }
 0x267   :  { %19 = sbr.rel (!%p17_p4) target bundleno = 1 (0x1), region = 93 }

</bundles_post_ra>
